<compile_context>
chip_gen: v5e
topology: v5e:2x2
jax: 0.10.0
libtpu: 0.0.40
codegen_flags: <defaults>
</compile_context>

<pallas_src>
import functools

import jax
import jax.numpy as jnp
from jax.experimental import pallas as pl
from jax.experimental.pallas import tpu as pltpu


_ROW_ALIGN = 16  # multiple of 8; also matches bf16 sublane packing


def _round_up(a: int, b: int) -> int:
    return ((a + b - 1) // b) * b


def _auto_row_tile(tm: int, m: int, d_in: int, h_dim: int,
                   compute_bytes: int) -> int:
    """Pick a row tile: aligned, VMEM-safe, and >= 2 grid steps when possible."""
    tm = max(_ROW_ALIGN, (int(tm) // _ROW_ALIGN) * _ROW_ALIGN)

    # Per-row VMEM footprint of the pipelined streams:
    #   2x double-buffered x tile + f32 hidden intermediate + 2x output row.
    per_row = 2 * d_in * compute_bytes + h_dim * 4 + 2 * 4
    # Resident weights: W1 + padded W2 (8 rows) + b1, all single-buffered.
    fixed = d_in * h_dim * compute_bytes + 8 * h_dim * 4 + h_dim * 4
    budget = 24 * 1024 * 1024  # headroom under the 32 MiB scoped default
    avail = max(budget - fixed, per_row * _ROW_ALIGN)
    tm_cap = max(_ROW_ALIGN, (avail // per_row) // _ROW_ALIGN * _ROW_ALIGN)
    tm = min(tm, tm_cap)

    # Keep >= 2 grid steps when there are enough rows (megacore sharding).
    return min(tm, _round_up(max(m // 2, 1), _ROW_ALIGN))


def _projection_kernel(x_ref, w1_ref, b1_ref, w2_ref, b2_ref, o_ref, *,
                       range_clipping: bool):
    # ---- Layer 1 (MXU): (tm, D_in) @ (D_in, H) -> (tm, H), f32 accumulation.
    h = jnp.dot(x_ref[...], w1_ref[...], preferred_element_type=jnp.float32)
    # Bias + ReLU in f32 (VPU).  Dropout(0.3) is identity at inference time.
    # TODO(synk): training-mode dropout (stochastic masking) not implemented.
    h = jnp.maximum(h + b1_ref[...], 0.0)

    # ---- Layer 2 (out_features == 1): contract over H with the tile's rows
    # landing on the lane axis:  (8, H) x (tm, H)^T -> (8, tm).
    # w2 is zero-padded to 8 rows host-side (row 0 = real weight vector), so
    # the MXU op is well-shaped and the output stays lane-dense (unmasked
    # full-width stores) instead of a (tm, 1) column of masked stores.
    out8 = jax.lax.dot_general(
        w2_ref[...], h, (((1,), (1,)), ((), ())),
        preferred_element_type=jnp.float32)            # (8, tm)
    out = out8[0:1, :] + b2_ref[0]                     # (1, tm); b2 from SMEM

    if range_clipping:
        out = jnp.tanh(out) * 2.0 + 3.0                # EUP tanh, VPU mul/add

    o_ref[...] = out.reshape(o_ref.shape).astype(o_ref.dtype)


def projection_forward(x, w1, b1, w2, b2, *, range_clipping=True, tm=512,
                       compute_dtype=jnp.bfloat16):
    """Fused Projection forward (inference).

    x : (..., input_dim) float32
    w1: (input_dim, hidden)   b1: (hidden,) or (1, hidden)
    w2: (hidden, 1)           b2: scalar / (1,) / (1, 1)
    Returns (..., 1) float32.

    `compute_dtype` controls the dtype of the dominant HBM stream (x) and W1;
    accumulation is always float32.
    """
    orig_shape = x.shape
    d_in = orig_shape[-1]
    x2d = x.reshape(-1, d_in)
    m = x2d.shape[0]
    h_dim = w1.shape[1]

    # --- tile-size selection ------------------------------------------------
    compute_bytes = jnp.dtype(compute_dtype).itemsize
    tm_eff = _auto_row_tile(tm, m, d_in, h_dim, compute_bytes)
    m_pad = _round_up(m, tm_eff)
    num_tiles = m_pad // tm_eff

    # --- operand preparation (cast before pad so padded bytes stay narrow) ---
    x2d = x2d.astype(compute_dtype)
    if m_pad != m:
        x2d = jnp.pad(x2d, ((0, m_pad - m), (0, 0)))
    w1c = w1.astype(compute_dtype)
    b1r = jnp.asarray(b1, jnp.float32).reshape(1, h_dim)
    w2_row = jnp.asarray(w2, jnp.float32).reshape(1, h_dim)
    w2_blk = jnp.concatenate(
        [w2_row, jnp.zeros((7, h_dim), jnp.float32)], axis=0)   # (8, H)
    b2s = jnp.asarray(b2, jnp.float32).reshape(1)                # SMEM scalar

    kernel = functools.partial(_projection_kernel,
                               range_clipping=range_clipping)

    out3 = pl.pallas_call(
        kernel,
        out_shape=jax.ShapeDtypeStruct((num_tiles, 1, tm_eff), jnp.float32),
        grid_spec=pltpu.PrefetchScalarGridSpec(
            num_scalar_prefetch=0,
            grid=(num_tiles,),
            in_specs=[
                pl.BlockSpec((tm_eff, d_in), lambda i: (i, 0)),      # x tile
                pl.BlockSpec((d_in, h_dim), lambda i: (0, 0)),       # W1 (full)
                pl.BlockSpec((1, h_dim), lambda i: (0, 0)),          # b1
                pl.BlockSpec((8, h_dim), lambda i: (0, 0)),          # W2 (8-row)
                pl.BlockSpec(memory_space=pltpu.MemorySpace.SMEM),   # b2 scalar
            ],
            out_specs=pl.BlockSpec((1, 1, tm_eff), lambda i: (i, 0, 0)),
        ),
        compiler_params=pltpu.CompilerParams(
            dimension_semantics=("parallel",)),
    )(x2d, w1c, b1r, w2_blk, b2s)

    out = out3.reshape(m_pad)[:m]
    return out.reshape(orig_shape[:-1] + (1,)).astype(jnp.float32)


def _reference(x, w1, b1, w2, b2, *, range_clipping):
    """Pure-JAX f32 reference."""
    x2 = x.reshape(-1, x.shape[-1]).astype(jnp.float32)
    h = jnp.maximum(
        jnp.dot(x2, w1, precision=jax.lax.Precision.HIGHEST)
        + jnp.asarray(b1, jnp.float32).reshape(1, -1), 0.0)
    o = jnp.dot(h, jnp.asarray(w2, jnp.float32).reshape(-1, 1),
                precision=jax.lax.Precision.HIGHEST)
    o = o + jnp.asarray(b2, jnp.float32).reshape(1, 1)
    if range_clipping:
        o = jnp.tanh(o) * 2.0 + 3.0
    return o.reshape(x.shape[:-1] + (1,))


def _init_params(key, input_dim, hidden_dim):
    """PyTorch-style uniform(-1/sqrt(fan_in), 1/sqrt(fan_in)) init."""
    k1, k2, k3, k4 = jax.random.split(key, 4)
    bound1 = 1.0 / float(input_dim) ** 0.5
    bound2 = 1.0 / float(hidden_dim) ** 0.5
    w1 = jax.random.uniform(k1, (input_dim, hidden_dim), jnp.float32,
                            -bound1, bound1)
    b1 = jax.random.uniform(k2, (1, hidden_dim), jnp.float32, -bound1, bound1)
    w2 = jax.random.uniform(k3, (hidden_dim, 1), jnp.float32, -bound2, bound2)
    b2 = jax.random.uniform(k4, (1, 1), jnp.float32, -bound2, bound2)
    return w1, b1, w2, b2


if __name__ == "__main__":
    # Small shapes consistent with forward(x): x of shape (B, T, input_dim).
    # B*T = 48 rows -> 2 grid tiles of 32 rows + zero-row padding (exercises
    # the multi-tile and remainder paths).
    B, T = 2, 24
    input_dim, hidden_dim = 32, 32

    key = jax.random.PRNGKey(0)
    kx, kp = jax.random.split(key)
    x = jax.random.normal(kx, (B, T, input_dim), jnp.float32)
    w1, b1, w2, b2 = _init_params(kp, input_dim, hidden_dim)

    # --- optimized path: bf16 MXU inputs, range clipping on -----------------
    out = projection_forward(x, w1, b1, w2, b2, range_clipping=True,
                             compute_dtype=jnp.bfloat16)
    jax.block_until_ready(out)
    assert out.shape == (B, T, 1)
    ref = _reference(x, w1, b1, w2, b2, range_clipping=True)
    assert jnp.allclose(out, ref, atol=2e-2, rtol=2e-2), \
        "bf16 path mismatch vs reference"

    # --- f32 path, range_clipping=False (tight tolerance) -------------------
    out_f32 = projection_forward(x, w1, b1, w2, b2, range_clipping=False,
                                 compute_dtype=jnp.float32)
    jax.block_until_ready(out_f32)
    ref_f32 = _reference(x, w1, b1, w2, b2, range_clipping=False)
    assert jnp.allclose(out_f32, ref_f32, atol=1e-4, rtol=1e-4), \
        "f32 path mismatch vs reference"

    print("KERNEL_OK")
</pallas_src>

<mosaic_0001>
module attributes {stable_mosaic.version = 11 : i64} {
  func.func @_projection_kernel(%arg0: i32, %arg1: memref<32x32xbf16, #tpu.memory_space<vmem>>, %arg2: memref<32x32xbf16, #tpu.memory_space<vmem>>, %arg3: memref<1x32xf32, #tpu.memory_space<vmem>>, %arg4: memref<8x32xf32, #tpu.memory_space<vmem>>, %arg5: memref<1xf32, #tpu.memory_space<smem>>, %arg6: memref<1x1x32xf32, #tpu.memory_space<vmem>>) attributes {dimension_semantics = [#tpu.dimension_semantics<parallel>], iteration_bounds = array<i64: 2>, scalar_prefetch = 0 : i64, scratch_operands = 0 : i64, tpu.core_type = #tpu.core_type<tc>, window_params = [{transform_indices = @transform_0, window_bounds = array<i64: 32, 32>}, {pipeline_mode = #tpu.pipeline_mode<synchronous>, transform_indices = @transform_1, window_bounds = array<i64: 32, 32>}, {pipeline_mode = #tpu.pipeline_mode<synchronous>, transform_indices = @transform_2, window_bounds = array<i64: 1, 32>}, {pipeline_mode = #tpu.pipeline_mode<synchronous>, transform_indices = @transform_3, window_bounds = array<i64: 8, 32>}, {transform_indices = @transform_4, window_bounds = array<i64: 1>}, {transform_indices = @transform_5, window_bounds = array<i64: 1, 1, 32>}]} {
    %c0 = arith.constant 0 : index
    %c0_0 = arith.constant 0 : index
    %0 = vector.load %arg1[%c0, %c0_0] : memref<32x32xbf16, #tpu.memory_space<vmem>>, vector<32x32xbf16>
    %c0_1 = arith.constant 0 : index
    %c0_2 = arith.constant 0 : index
    %1 = vector.load %arg2[%c0_1, %c0_2] : memref<32x32xbf16, #tpu.memory_space<vmem>>, vector<32x32xbf16>
    %cst = arith.constant dense<0.000000e+00> : vector<32x32xf32>
    %2 = tpu.matmul %0, %1, %cst {dimension_numbers = #tpu.dot_dimension_numbers<[1], [0], [0], [1], [0, 0, 1, 1], [], []>} : vector<32x32xbf16>, vector<32x32xbf16>, vector<32x32xf32> -> vector<32x32xf32>
    %c0_3 = arith.constant 0 : index
    %c0_4 = arith.constant 0 : index
    %3 = vector.load %arg3[%c0_3, %c0_4] : memref<1x32xf32, #tpu.memory_space<vmem>>, vector<1x32xf32>
    %4 = vector.broadcast %3 : vector<1x32xf32> to vector<32x32xf32>
    %5 = arith.addf %2, %4 : vector<32x32xf32>
    %cst_5 = arith.constant 0.000000e+00 : f32
    %6 = vector.broadcast %cst_5 : f32 to vector<32x32xf32>
    %7 = arith.maximumf %5, %6 : vector<32x32xf32>
    %c0_6 = arith.constant 0 : index
    %c0_7 = arith.constant 0 : index
    %8 = vector.load %arg4[%c0_6, %c0_7] : memref<8x32xf32, #tpu.memory_space<vmem>>, vector<8x32xf32>
    %cst_8 = arith.constant dense<0.000000e+00> : vector<8x32xf32>
    %9 = tpu.matmul %8, %7, %cst_8 {dimension_numbers = #tpu.dot_dimension_numbers<[1], [1], [0], [0], [0, 0, 1, 0], [], []>} : vector<8x32xf32>, vector<32x32xf32>, vector<8x32xf32> -> vector<8x32xf32>
    %10 = vector.extract_strided_slice %9 {offsets = [0, 0], sizes = [1, 32], strides = [1, 1]} : vector<8x32xf32> to vector<1x32xf32>
    %c0_9 = arith.constant 0 : index
    %11 = memref.load %arg5[%c0_9] : memref<1xf32, #tpu.memory_space<smem>>
    %12 = vector.broadcast %11 : f32 to vector<1x32xf32>
    %13 = arith.addf %10, %12 : vector<1x32xf32>
    %14 = math.tanh %13 : vector<1x32xf32>
    %cst_10 = arith.constant 2.000000e+00 : f32
    %15 = vector.broadcast %cst_10 : f32 to vector<1x32xf32>
    %16 = arith.mulf %14, %15 : vector<1x32xf32>
    %cst_11 = arith.constant 3.000000e+00 : f32
    %17 = vector.broadcast %cst_11 : f32 to vector<1x32xf32>
    %18 = arith.addf %16, %17 : vector<1x32xf32>
    %19 = vector.shape_cast %18 : vector<1x32xf32> to vector<1x1x32xf32>
    %c0_12 = arith.constant 0 : index
    %c0_13 = arith.constant 0 : index
    %c0_14 = arith.constant 0 : index
    %20 = vector.load %arg6[%c0_12, %c0_13, %c0_14] : memref<1x1x32xf32, #tpu.memory_space<vmem>>, vector<1x1x32xf32>
    tpu.vector_store %arg6[%c0_12, %c0_13, %c0_14], %19 {strides = array<i32>} : memref<1x1x32xf32, #tpu.memory_space<vmem>>, vector<1x1x32xf32>,
    return
  }
  func.func @transform_0(%arg0: i32) -> (i32, i32) {
    %c0_i32 = arith.constant 0 : i32
    %c0_i32_0 = arith.constant 0 : i32
    return %arg0, %c0_i32 : i32, i32
  }
  func.func @transform_1(%arg0: i32) -> (i32, i32) {
    %c0_i32 = arith.constant 0 : i32
    %c0_i32_0 = arith.constant 0 : i32
    %c0_i32_1 = arith.constant 0 : i32
    return %c0_i32, %c0_i32_0 : i32, i32
  }
  func.func @transform_2(%arg0: i32) -> (i32, i32) {
    %c0_i32 = arith.constant 0 : i32
    %c0_i32_0 = arith.constant 0 : i32
    %c0_i32_1 = arith.constant 0 : i32
    return %c0_i32, %c0_i32_0 : i32, i32
  }
  func.func @transform_3(%arg0: i32) -> (i32, i32) {
    %c0_i32 = arith.constant 0 : i32
    %c0_i32_0 = arith.constant 0 : i32
    %c0_i32_1 = arith.constant 0 : i32
    return %c0_i32, %c0_i32_0 : i32, i32
  }
  func.func @transform_4(%arg0: i32) -> i32 {
    %c0_i32 = arith.constant 0 : i32
    %c0_i32_0 = arith.constant 0 : i32
    return %c0_i32 : i32
  }
  func.func @transform_5(%arg0: i32) -> (i32, i32, i32) {
    %c0_i32 = arith.constant 0 : i32
    %c0_i32_0 = arith.constant 0 : i32
    %c0_i32_1 = arith.constant 0 : i32
    return %arg0, %c0_i32, %c0_i32_0 : i32, i32, i32
  }
}

</mosaic_0001>

<bundles_post_ra>
// kernel: tpu_custom_call.1
= control target key start
LH: loop header
LB: loop body
LE: loop exit
PB: predicated region body
PF: predicated region fallthrough
CT: control target
= control target key end

     0   :  { %s681_s0 = inlined_call_operand.vmem [shape: bf16[64,32], index: 0, kind: input, shape index: {}]   ;;  %s682_s1 = inlined_call_operand.vmem [shape: bf16[32,32], index: 1, kind: input, shape index: {}]   ;;  %s683_s2 = inlined_call_operand.vmem [shape: f32[1,32], index: 2, kind: input, shape index: {}]   ;;  %s684_s3 = inlined_call_operand.vmem [shape: f32[8,32], index: 3, kind: input, shape index: {}]   ;;  %s685_s4 = inlined_call_operand.<no memory space> [shape: f32[1], index: 4, kind: input, shape index: {}]   ;;  %s686_s5 = inlined_call_operand.hbm [shape: f32[2,1,32], index: 5, kind: output, shape index: {}]  }
   0x1   :  { %10 = sst [smem:[#allocation2]] %s685_s4 }
   0x2   :  { %11 = vsyncpa [#allocation4], 0 }
   0x3   :  { %13 = vsyncpa [#allocation4 + $0x1], 0  ;;  %s578_s20 = smov 0   ;;  %s580_s21 = smov 0  }
   0x4   :  { %s582_s22 = smov 0   ;;  %s584_s23 = smov 0  }
   0x5 LB: > { %s599_s4 = sadd.s32 4294967295, %s543_s23   ;;  %s402_s24 = sadd.s32 4294967294, %s543_s23   ;;  %s543_s23 = sphi %s584_s23, %s692_s23   ;;  %s539_s22 = sphi %s582_s22, %s691_s22   ;;  %s535_s21 = sphi %s580_s21, %s690_s21   ;;  %s531_s20 = sphi %s578_s20, %s689_s20  }
   0x6   : > { %s603_s25 = sadd.s32 1, %s543_s23   ;;  %s136_s26 = sadd.s32 1, %s539_s22 }
   0x7   : > { %s133_s27 = ssub.s32 %s543_s23, %s603_s25  ;;  %p146_p0 = scmp.ne.s32.totalorder %s539_s22, %s535_s21 }
   0x8   : > { %p134_p1 = scmp.eq.s32.totalorder %s133_s27, 0  ;;  %p147_p2 = scmp.eq.s32.totalorder %s599_s4, 1 }
   0x9   : > { %p152_p3 = scmp.ne.s32.totalorder %s535_s21, %s531_s20  ;;  %p153_p4 = scmp.eq.s32.totalorder %s402_s24, 1 }
   0xa   : > { %s614_s28 = scalar_select %p134_p1, %s539_s22, %s136_s26  }
   0xb   : > { %p616_p5 = por %p147_p2, %p146_p0  ;;  %p620_p6 = por %p153_p4, %p152_p3 }
   0xc   : > { %p405_p7 = scmp.ge.s32.totalorder %s543_s23, 1  ;;  %p192_p8 = scmp.lt.s32.totalorder %s543_s23, 3 }
   0xe   : > { %p193_p9 = pnand %p405_p7, %p192_p8 }
   0xf   : > { %s406_s8 = sshll.u32 (!%p193_p9), %s599_s4, 2  ;;  %s326_s19 = sld [smem:[#allocation2]] (!%p193_p9) }
  0x10   : > { %196 = sbr.rel (%p193_p9) target bundleno = 330 (0x14a), region = 40  ;;  %p220_p10 = scmp.lt.s32.totalorder (!%p193_p9), %s406_s8, 7 }
  0x11   : > { %s217_s24 = sand.u32 (!%p193_p9), 1, %s535_s21   ;;  %s343_s6 = scalar_lea.hbm (!%p193_p9), %s686_s5, %s599_s4 }
  0x12   : > { %s218_s7 = scalar_lea.vmem (!%p193_p9), [#allocation3], %s217_s24  ;;  %s347_s9 = sshll.u32 (!%p193_p9), %s343_s6, 4  ;;  %s348_s9 = int_to_ptr.hbm [resolvable:$true] %s347_s9 }
  0x13   : > { %s335_s10 = scalar_lea.sflag (!%p193_p9), [#allocation4], %s217_s24 }
  0x15   : > { %v436_v0 = vld [vmem:[%s682_s1 + $0x8] sm:$0xff]  ;;  %v435_v1 = vld [vmem:[%s682_s1] sm:$0xff]  ;;  %s694_s8 = smov (!%p220_p10, %s406_s8), 7  ;;  %vm260_vm0 = vcmask 261120   ;;  %v327_v18 = vstv %s326_s19  ;;  %vm332_vm1 = vcmask 253952  }
  0x16   : > { %437 = vmatpush.bf16.msra.mxu2 %v436_v0  ;;  %273 = vmatpush.bf16.msra.mxu0 %v436_v0  ;;  %s407_s11 = sshll.u32 %s694_s8, 2  ;;  %v478_v6 = vld [vmem:[%s683_s2] ss:$0 sm:$0xff]  ;;  %s345_s8 = sshll.u32 %s218_s7, 4  ;;  %s346_s8 = int_to_ptr.vmem [resolvable:$true] %s345_s8 }
  0x17   : > { %s223_s14 = scalar_lea.vmem %s681_s0, %s407_s11  ;;  %v290_v17 = vld [vmem:[%s684_s3] sm:$0xff]  ;;  %s495_s11 = sshra.s32 %s348_s9, 4  ;;  %s496_s11 = int_to_ptr.hbm [resolvable:$true] %s495_s11 }
  0x18   : > { %v434_v2 = vld [vmem:[%s223_s14 + $0x8] sm:$0xff]  ;;  %v433_v3 = vld [vmem:[%s223_s14] sm:$0xff]  ;;  %s497_s12 = scalar_lea.hbm %s496_s11, 1  ;;  %s501_s14 = scalar_lea.hbm %s686_s5, 2 }
  0x19   : > { %p498_p11 = scmp.ne.s32.totalorder %s496_s11, %s497_s12  ;;  %p502_p0 = scmp.lt.s32.totalorder %s496_s11, %s686_s5 }
  0x1a   : > { %438 = vmatpush.bf16.msra.mxu2 %v435_v1  ;;  %274 = vmatpush.bf16.msra.mxu0 %v435_v1  ;;  %p503_p1 = scmp.lt.s32.totalorder %s501_s14, %s497_s12 }
  0x1b   : > { %p499_p12 = pnand %p498_p11, %p616_p5 }
  0x1c   : > { %p504_p2 = por %p503_p1, %p502_p0 }
  0x1d   : > { %425 = vmatmul.msk.bf16.vlgmr.msra.gmra.mxu2 %vm260_vm0, %v434_v2  ;;  %424 = vmatmul.msk.bf16.vlgmr.msra.gmra.mxu0 %vm260_vm0, %v433_v3  ;;  %p500_p13 = pneg %p499_p12 }
  0x1f   : > { %p505_p3 = pnand %p504_p2, %p500_p13 }
  0x9a   : > { %v276_v5 = vpop.f32.mrf.mxu0 }
  0x9b   : > { %v277_v14 = vadd.f32 %v478_v6, %v276_v5 }
  0x9d   : > { %v286_v16 = vmax.f32 %v277_v14, 0.0 }
  0xa0   : > { %v281_v4 = vpop.f32.mrf.mxu2 }
  0xa1   : > { %v282_v9 = vadd.f32 %v478_v6, %v281_v4 }
  0xa2   : > { %v278_v11 = vpop.f32.mrf.mxu0 }
  0xa3   : > { %v288_v12 = vmax.f32 %v282_v9, 0.0  ;;  %v279_v13 = vadd.f32 %v478_v6, %v278_v11 }
  0xa5   : > { %v287_v15 = vmax.f32 %v279_v13, 0.0 }
  0xa8   : > { %v283_v7 = vpop.f32.mrf.mxu2 }
  0xa9   : > { %v284_v8 = vadd.f32 %v478_v6, %v283_v7 }
  0xab   : > { %v289_v10 = vmax.f32 %v284_v8, 0.0 }
  0xad   : > { %426 = vmatpush.xpose.msk.msra.mxu1 %vm260_vm0, %v289_v10 }
  0xb1   : > { %427 = vmatpush.xpose.msk.msra.mxu1 %vm260_vm0, %v288_v12 }
  0xb5   : > { %428 = vmatpush.xpose.msk.msra.mxu1 %vm260_vm0, %v287_v15 }
  0xb9   : > { %429 = vmatpush.xpose.msk.msra.mxu1 %vm260_vm0, %v286_v16 }
  0xbc   : > { %430 = vmatmul.msk.f32.vlgmr.msra.gmra.mxu1 %vm260_vm0, %v290_v17 }
 0x139   : > { %v323_v19 = vpop.f32.mrf.mxu1 }
 0x13a   : > { %v328_v20 = vadd.f32 %v327_v18, %v323_v19 }
 0x13c   : > { %479 = vtanh.f32 %v328_v20 }
 0x142   : > { %v480_v21 = vpop.eup %479 }
 0x143   : > { %v330_v22 = vmul.f32 2.0, %v480_v21 }
 0x145   : > { %v331_v23 = vadd.f32 3.0, %v330_v22 }
 0x147   : > { %333 = vst.msk [vmem:[%s218_s7] sm:$0x1] %vm332_vm1, %v331_v23 }
 0x148   : > { %508 = shalt.err (!%p505_p3)
}
 0x149   : > { %439 = dma.vmem_to_hbm [thread:$0]  (%p616_p5), %s346_s8, 16, %s348_s9, %s335_s10  }
 0x14a PF: > { %p445_p4 = scmp.ge.s32.totalorder %s543_s23, 2  ;;  %s359_s17 = sand.u32 1, %s531_s20  }
 0x14b   : > { %s360_s18 = scalar_lea.sflag [#allocation4], %s359_s17 }
 0x14c   : > { %p442_p7 = pnand %p445_p4, %p620_p6 }
 0x14e   : > { %p443_p8 = pneg %p442_p7 }
 0x150   : > { %526 = dma.done.wait (%p443_p8), %s360_s18, 16  }
 0x151   : > { %528 = vsyncadd (%p443_p8), %s360_s18, 4294967280  ;;  %p16_p9 = scmp.ge.s32.totalorder %s603_s25, 4   ;;  %s689_s20 = smov %s535_s21 }
 0x152   : > { %s690_s21 = smov %s539_s22  ;;  %s691_s22 = smov %s614_s28 }
 0x153   : > { %s692_s23 = smov %s603_s25  ;;  %18 = sbr.rel (!%p16_p9) target bundleno = 5 (0x5), region = 75 }
 0x158   :  { %365 = vsyncpa [#allocation4], 1 }
 0x159   :  { %367 = vsyncpa [#allocation4 + $0x1], 1 }

</bundles_post_ra>
